<compile_context>
chip_gen: v7x
topology: tpu7x:2x2x1
jax: 0.10.0
libtpu: 0.0.40
codegen_flags: <defaults>
</compile_context>

<pallas_src>
import functools

import jax
import jax.numpy as jnp
from jax.experimental import pallas as pl
from jax.experimental.pallas import tpu as pltpu

_MIB = 1024 * 1024


# --------------------------------------------------------------------------
# Helpers
# --------------------------------------------------------------------------
def _col_mask(j, tile_n, tile_c, c):
    """Validity mask for class (lane) columns of the tile at class-tile j."""
    col = jax.lax.broadcasted_iota(jnp.int32, (tile_n, tile_c), 1) + j * tile_c
    return col < c


def _chip_tiling_params():
    """Per-generation tile caps, VMEM limit and pipeline budget."""
    try:
        info = pltpu.get_tpu_info()
        vmem_cap = int(getattr(info, "vmem_capacity_bytes", 128 * _MIB))
    except Exception:  # interpret mode / older jax: assume 128 MiB class
        vmem_cap = 128 * _MIB
    if vmem_cap <= 64 * _MIB:
        # v7x-class: 64 MiB physical VMEM per TensorCore.
        return dict(max_tile_c=4096, max_tile_n=128,
                    vmem_limit=48 * _MIB, budget=36 * _MIB)
    # v5e / v6e: 128 MiB physical VMEM (v5e scoped default is only 16 MiB,
    # so the explicit limit below matters there too).
    return dict(max_tile_c=8192, max_tile_n=256,
                vmem_limit=64 * _MIB, budget=52 * _MIB)


# --------------------------------------------------------------------------
# Kernels
# --------------------------------------------------------------------------
def _ce_softmax_kernel(x_ref, t_ref, o_ref, m_sc, l_sc, tx_sc, ts_sc, *,
                       n, c, tile_n, tile_c, mask_rows, mask_cols,
                       normalized_targets):
    """Grid: (batch tiles [parallel], class tiles [arbitrary, reduction])."""
    i = pl.program_id(0)
    j = pl.program_id(1)
    nj = pl.num_programs(1)

    @pl.when(j == 0)
    def _():
        m_sc[...] = jnp.full_like(m_sc, -jnp.inf)
        l_sc[...] = jnp.zeros_like(l_sc)
        tx_sc[...] = jnp.zeros_like(tx_sc)
        ts_sc[...] = jnp.zeros_like(ts_sc)

    x = x_ref[...].astype(jnp.float32)          # (tile_n, tile_c)
    t = t_ref[...].astype(jnp.float32)          # (tile_n, tile_c)

    def update(x_lse, t_eff, tx_eff):
        # online (flash-style) log-sum-exp over the class (lane) axis
        m_prev = m_sc[...]
        m_new = jnp.maximum(m_prev, jnp.max(x_lse, axis=1, keepdims=True))
        alpha = jnp.exp(m_prev - m_new)
        l_sc[...] = alpha * l_sc[...] + jnp.sum(jnp.exp(x_lse - m_new),
                                                axis=1, keepdims=True)
        m_sc[...] = m_new
        tx_sc[...] += jnp.sum(tx_eff, axis=1, keepdims=True)
        if not normalized_targets:
            ts_sc[...] += jnp.sum(t_eff, axis=1, keepdims=True)

    if mask_cols:
        # Column mask is identically true for j < nj-1, so only the last
        # class tile pays for iota/compare/selects.
        @pl.when(j < nj - 1)
        def _():
            update(x, t, t * x)

        @pl.when(j == nj - 1)
        def _():
            cmask = _col_mask(j, tile_n, tile_c, c)
            x_lse = jnp.where(cmask, x, -jnp.inf)       # drop from LSE
            t_eff = jnp.where(cmask, t, 0.0)
            # zero x in masked lanes too so possible non-finite pad garbage
            # cannot turn 0 * inf into NaN in the row sum
            tx_eff = t_eff * jnp.where(cmask, x, 0.0)
            update(x_lse, t_eff, tx_eff)
    else:
        update(x, t, t * x)

    @pl.when(j == nj - 1)
    def _():
        # row_loss = sum_c(-t*logsoftmax(x)) = (m + log l)*sum_c(t) - sum_c(t*x)
        lse = m_sc[...] + jnp.log(l_sc[...])              # (tile_n, 1)
        if normalized_targets:
            row_loss = lse - tx_sc[...]
        else:
            row_loss = lse * ts_sc[...] - tx_sc[...]
        if mask_rows:
            # padded rows carry garbage/NaN confined per row; the select
            # (not a multiply) removes them here, once, on (tile_n, 1) data.
            rows = jax.lax.broadcasted_iota(jnp.int32, (tile_n, 1), 0) + i * tile_n
            row_loss = jnp.where(rows < n, row_loss, 0.0)
        o_ref[...] = jnp.zeros_like(o_ref) + jnp.sum(row_loss)


def _bce_logits_kernel(x_ref, t_ref, o_ref, acc_sc, *,
                       n, c, tile_n, tile_c, mask_rows, mask_cols):
    """binary_cross_entropy_with_logits; per-batch-tile partial sum."""
    i = pl.program_id(0)
    j = pl.program_id(1)
    nj = pl.num_programs(1)

    @pl.when(j == 0)
    def _():
        acc_sc[...] = jnp.zeros_like(acc_sc)

    x = x_ref[...].astype(jnp.float32)
    t = t_ref[...].astype(jnp.float32)
    # stable formulation: max(x,0) - x*t + log(1 + exp(-|x|))
    loss = jnp.maximum(x, 0.0) - x * t + jnp.log1p(jnp.exp(-jnp.abs(x)))

    if mask_cols:
        @pl.when(j < nj - 1)
        def _():
            acc_sc[...] += jnp.sum(loss, axis=1, keepdims=True)

        @pl.when(j == nj - 1)
        def _():
            cmask = _col_mask(j, tile_n, tile_c, c)
            acc_sc[...] += jnp.sum(jnp.where(cmask, loss, 0.0),
                                   axis=1, keepdims=True)
    else:
        acc_sc[...] += jnp.sum(loss, axis=1, keepdims=True)

    @pl.when(j == nj - 1)
    def _():
        acc = acc_sc[...]
        if mask_rows:
            rows = jax.lax.broadcasted_iota(jnp.int32, (tile_n, 1), 0) + i * tile_n
            acc = jnp.where(rows < n, acc, 0.0)
        o_ref[...] = jnp.zeros_like(o_ref) + jnp.sum(acc)


# --------------------------------------------------------------------------
# Wrapper
# --------------------------------------------------------------------------
def cross_entropy(inp, target, size_average=True, func_type="softmax",
                  tile_n=None, tile_c=None, normalized_targets=False):
    """Pallas equivalent of the PyTorch `cross_entropy` module forward."""
    assert inp.shape == target.shape and inp.ndim == 2
    n, c = inp.shape
    itemsize = jnp.dtype(inp.dtype).itemsize

    params = _chip_tiling_params()
    max_tile_c = params["max_tile_c"]
    max_tile_n = params["max_tile_n"]
    vmem_limit = params["vmem_limit"]
    budget = params["budget"]

    # Bytes live in VMEM per (row, class) element:
    #   2 inputs x 2 pipeline buffers at the input dtype, plus ~4 block-sized
    #   f32 temporaries (upcasts / exp pass / masks) that Mosaic materializes,
    #   budgeted at 4 B/elem regardless of input dtype.
    per_elem = 2 * 2 * itemsize + 4 * 4

    # ---- tile selection --------------------------------------------------
    if tile_c is None:
        tile_c = c if c <= max_tile_c else max_tile_c
    if tile_c != c:
        assert tile_c % 128 == 0, "tile_c must be a multiple of 128 or equal C"

    if tile_n is None:
        max_rows = budget // (per_elem * tile_c)
        max_rows = int(max(8, min(max_tile_n, (max_rows // 8) * 8)))
        if n >= 16:
            # keep >= 2 batch tiles so both v7x TensorCores get work along the
            # "parallel" grid axis (harmless extra steps on 1-TC v5e/v6e).
            two_tiles = ((pl.cdiv(n, 2) + 7) // 8) * 8
            max_rows = min(max_rows, max(8, two_tiles))
        tile_n = n if n <= max_rows else max_rows
    if tile_n != n:
        assert tile_n % 8 == 0, "tile_n must be a multiple of 8 or equal N"

    ni = pl.cdiv(n, tile_n)
    nj = pl.cdiv(c, tile_c)
    mask_rows = (n % tile_n) != 0
    mask_cols = (c % tile_c) != 0

    common = dict(n=n, c=c, tile_n=tile_n, tile_c=tile_c,
                  mask_rows=mask_rows, mask_cols=mask_cols)
    if func_type == "softmax":
        kernel = functools.partial(_ce_softmax_kernel,
                                   normalized_targets=normalized_targets,
                                   **common)
        scratch = [pltpu.VMEM((tile_n, 1), jnp.float32) for _ in range(4)]
        transcendentals = n * c            # exp per element
    else:
        kernel = functools.partial(_bce_logits_kernel, **common)
        scratch = [pltpu.VMEM((tile_n, 1), jnp.float32)]
        transcendentals = 2 * n * c        # exp + log1p per element

    cost = pl.CostEstimate(
        flops=8 * n * c,
        transcendentals=transcendentals,
        bytes_accessed=2 * n * c * itemsize + ni * 8 * 128 * 4,
    )

    partials = pl.pallas_call(
        kernel,
        out_shape=jax.ShapeDtypeStruct((ni, 8, 128), jnp.float32),
        grid_spec=pltpu.PrefetchScalarGridSpec(
            num_scalar_prefetch=0,
            grid=(ni, nj),
            in_specs=[
                pl.BlockSpec((tile_n, tile_c), lambda i, j: (i, j)),
                pl.BlockSpec((tile_n, tile_c), lambda i, j: (i, j)),
            ],
            # one lane-dense partial-sum block per batch tile -> the batch axis
            # is safely "parallel" (both v7x TensorCores stream HBM concurrently)
            out_specs=pl.BlockSpec((1, 8, 128), lambda i, j: (i, 0, 0)),
            scratch_shapes=scratch,
        ),
        compiler_params=pltpu.CompilerParams(
            dimension_semantics=("parallel", "arbitrary"),
            vmem_limit_bytes=vmem_limit,
        ),
        cost_estimate=cost,
    )(inp, target)

    total = jnp.sum(partials[:, 0, 0])

    if func_type == "softmax":
        out = total / n if size_average else total
    else:
        # F.binary_cross_entropy_with_logits defaults to mean over all elements;
        # the original PyTorch module ignores size_average on this branch too.
        out = total / (n * c)
    # Reduced loss in float32 (matches PyTorch for f32 inputs; avoids a lossy
    # downcast for bf16 inputs).
    return out


# --------------------------------------------------------------------------
# Reference (pure JAX) for correctness check
# --------------------------------------------------------------------------
def _ref_cross_entropy(inp, target, size_average=True, func_type="softmax"):
    x = inp.astype(jnp.float32)
    t = target.astype(jnp.float32)
    if func_type == "softmax":
        logsm = jax.nn.log_softmax(x, axis=1)
        per_row = jnp.sum(-t * logsm, axis=1)
        return jnp.mean(per_row) if size_average else jnp.sum(per_row)
    else:
        loss = jnp.maximum(x, 0.0) - x * t + jnp.log1p(jnp.exp(-jnp.abs(x)))
        return jnp.mean(loss)


# --------------------------------------------------------------------------
if __name__ == "__main__":
    key = jax.random.PRNGKey(0)
    k1, k2, k3, k4, k5 = jax.random.split(key, 5)

    ok = True

    # --- small demo shape -------------------------------------------------
    N, C = 16, 32
    logits = jax.random.normal(k1, (N, C), dtype=jnp.float32)
    labels = jax.random.randint(k2, (N,), 0, C)
    one_hot = jax.nn.one_hot(labels, C, dtype=jnp.float32)          # hard targets
    soft_t = jax.nn.softmax(jax.random.normal(k3, (N, C)), axis=1)  # soft targets

    for tgt in (one_hot, soft_t):
        for size_average in (True, False):
            got = jax.block_until_ready(
                cross_entropy(logits, tgt, size_average=size_average,
                              func_type="softmax"))
            want = _ref_cross_entropy(logits, tgt, size_average=size_average,
                                      func_type="softmax")
            ok &= bool(jnp.allclose(got, want, rtol=1e-4, atol=1e-4))

    # normalized-targets fast path (sum_c t == 1 for these targets)
    got = jax.block_until_ready(
        cross_entropy(logits, soft_t, func_type="softmax",
                      normalized_targets=True))
    want = _ref_cross_entropy(logits, soft_t, func_type="softmax")
    ok &= bool(jnp.allclose(got, want, rtol=1e-4, atol=1e-4))

    # bf16 inputs (upcast in-register)
    got = jax.block_until_ready(
        cross_entropy(logits.astype(jnp.bfloat16), soft_t.astype(jnp.bfloat16),
                      func_type="softmax"))
    want = _ref_cross_entropy(logits.astype(jnp.bfloat16),
                              soft_t.astype(jnp.bfloat16), func_type="softmax")
    ok &= bool(jnp.allclose(got, want, rtol=1e-3, atol=1e-3))

    got = jax.block_until_ready(cross_entropy(logits, soft_t, func_type="bce"))
    want = _ref_cross_entropy(logits, soft_t, func_type="bce")
    ok &= bool(jnp.allclose(got, want, rtol=1e-4, atol=1e-4))

    # --- exercise the tiled / masked path (N, C not divisible by tiles) ----
    N2, C2 = 20, 160
    logits2 = jax.random.normal(k4, (N2, C2), dtype=jnp.float32)
    soft_t2 = jax.nn.softmax(jax.random.normal(k5, (N2, C2)), axis=1)
    for size_average in (True, False):
        got = jax.block_until_ready(
            cross_entropy(logits2, soft_t2, size_average=size_average,
                          func_type="softmax", tile_n=8, tile_c=128))
        want = _ref_cross_entropy(logits2, soft_t2, size_average=size_average,
                                  func_type="softmax")
        ok &= bool(jnp.allclose(got, want, rtol=1e-4, atol=1e-4))

    got = jax.block_until_ready(
        cross_entropy(logits2, soft_t2, func_type="bce", tile_n=8, tile_c=128))
    want = _ref_cross_entropy(logits2, soft_t2, func_type="bce")
    ok &= bool(jnp.allclose(got, want, rtol=1e-4, atol=1e-4))

    if ok:
        print("KERNEL_OK")
    else:
        print("MISMATCH")
</pallas_src>

<mosaic_0001>
module attributes {stable_mosaic.version = 11 : i64} {
  func.func @_ce_softmax_kernel(%arg0: i32, %arg1: i32, %arg2: memref<8x32xf32, #tpu.memory_space<vmem>>, %arg3: memref<8x32xf32, #tpu.memory_space<vmem>>, %arg4: memref<1x8x128xf32, #tpu.memory_space<vmem>>, %arg5: memref<8x1xf32, #tpu.memory_space<vmem>>, %arg6: memref<8x1xf32, #tpu.memory_space<vmem>>, %arg7: memref<8x1xf32, #tpu.memory_space<vmem>>, %arg8: memref<8x1xf32, #tpu.memory_space<vmem>>) attributes {dimension_semantics = [#tpu.dimension_semantics<parallel>, #tpu.dimension_semantics<arbitrary>], iteration_bounds = array<i64: 2, 1>, scalar_prefetch = 0 : i64, scratch_operands = 4 : i64, tpu.core_type = #tpu.core_type<tc>, window_params = [{transform_indices = @transform_0, window_bounds = array<i64: 8, 32>}, {transform_indices = @transform_1, window_bounds = array<i64: 8, 32>}, {transform_indices = @transform_2, window_bounds = array<i64: 1, 8, 128>}]} {
    %c0_i32 = arith.constant 0 : i32
    %0 = arith.cmpi eq, %arg1, %c0_i32 : i32
    %1 = arith.extui %0 : i1 to i32
    %c0_i32_0 = arith.constant 0 : i32
    %2 = arith.cmpi ne, %1, %c0_i32_0 : i32
    scf.if %2 {
      %cst_25 = arith.constant 0xFF800000 : f32
      %35 = vector.broadcast %cst_25 : f32 to vector<8x1xf32>
      %c0_26 = arith.constant 0 : index
      %c0_27 = arith.constant 0 : index
      %36 = vector.load %arg5[%c0_26, %c0_27] : memref<8x1xf32, #tpu.memory_space<vmem>>, vector<8x1xf32>
      tpu.vector_store %arg5[%c0_26, %c0_27], %35 {strides = array<i32>} : memref<8x1xf32, #tpu.memory_space<vmem>>, vector<8x1xf32>,
      %cst_28 = arith.constant 0.000000e+00 : f32
      %37 = vector.broadcast %cst_28 : f32 to vector<8x1xf32>
      %c0_29 = arith.constant 0 : index
      %c0_30 = arith.constant 0 : index
      %38 = vector.load %arg6[%c0_29, %c0_30] : memref<8x1xf32, #tpu.memory_space<vmem>>, vector<8x1xf32>
      tpu.vector_store %arg6[%c0_29, %c0_30], %37 {strides = array<i32>} : memref<8x1xf32, #tpu.memory_space<vmem>>, vector<8x1xf32>,
      %cst_31 = arith.constant 0.000000e+00 : f32
      %39 = vector.broadcast %cst_31 : f32 to vector<8x1xf32>
      %c0_32 = arith.constant 0 : index
      %c0_33 = arith.constant 0 : index
      %40 = vector.load %arg7[%c0_32, %c0_33] : memref<8x1xf32, #tpu.memory_space<vmem>>, vector<8x1xf32>
      tpu.vector_store %arg7[%c0_32, %c0_33], %39 {strides = array<i32>} : memref<8x1xf32, #tpu.memory_space<vmem>>, vector<8x1xf32>,
      %cst_34 = arith.constant 0.000000e+00 : f32
      %41 = vector.broadcast %cst_34 : f32 to vector<8x1xf32>
      %c0_35 = arith.constant 0 : index
      %c0_36 = arith.constant 0 : index
      %42 = vector.load %arg8[%c0_35, %c0_36] : memref<8x1xf32, #tpu.memory_space<vmem>>, vector<8x1xf32>
      tpu.vector_store %arg8[%c0_35, %c0_36], %41 {strides = array<i32>} : memref<8x1xf32, #tpu.memory_space<vmem>>, vector<8x1xf32>,
    } else {
    }
    %c0 = arith.constant 0 : index
    %c0_1 = arith.constant 0 : index
    %3 = vector.load %arg2[%c0, %c0_1] : memref<8x32xf32, #tpu.memory_space<vmem>>, vector<8x32xf32>
    %c0_2 = arith.constant 0 : index
    %c0_3 = arith.constant 0 : index
    %4 = vector.load %arg3[%c0_2, %c0_3] : memref<8x32xf32, #tpu.memory_space<vmem>>, vector<8x32xf32>
    %5 = arith.mulf %4, %3 : vector<8x32xf32>
    %c0_4 = arith.constant 0 : index
    %c0_5 = arith.constant 0 : index
    %6 = vector.load %arg5[%c0_4, %c0_5] : memref<8x1xf32, #tpu.memory_space<vmem>>, vector<8x1xf32>
    %cst = arith.constant dense<0xFF800000> : vector<8xf32>
    %7 = vector.multi_reduction <maximumf>, %3, %cst [1] : vector<8x32xf32> to vector<8xf32>
    %8 = vector.shape_cast %7 : vector<8xf32> to vector<8x1xf32>
    %9 = arith.maximumf %6, %8 : vector<8x1xf32>
    %10 = arith.subf %6, %9 : vector<8x1xf32>
    %11 = math.exp %10 : vector<8x1xf32>
    %c0_6 = arith.constant 0 : index
    %c0_7 = arith.constant 0 : index
    %12 = vector.load %arg6[%c0_6, %c0_7] : memref<8x1xf32, #tpu.memory_space<vmem>>, vector<8x1xf32>
    %13 = arith.mulf %11, %12 : vector<8x1xf32>
    %14 = vector.broadcast %9 : vector<8x1xf32> to vector<8x32xf32>
    %15 = arith.subf %3, %14 : vector<8x32xf32>
    %16 = math.exp %15 : vector<8x32xf32>
    %cst_8 = arith.constant dense<0.000000e+00> : vector<8xf32>
    %17 = vector.multi_reduction <add>, %16, %cst_8 [1] : vector<8x32xf32> to vector<8xf32>
    %18 = vector.shape_cast %17 : vector<8xf32> to vector<8x1xf32>
    %19 = arith.addf %13, %18 : vector<8x1xf32>
    %c0_9 = arith.constant 0 : index
    %c0_10 = arith.constant 0 : index
    %20 = vector.load %arg6[%c0_9, %c0_10] : memref<8x1xf32, #tpu.memory_space<vmem>>, vector<8x1xf32>
    tpu.vector_store %arg6[%c0_9, %c0_10], %19 {strides = array<i32>} : memref<8x1xf32, #tpu.memory_space<vmem>>, vector<8x1xf32>,
    %c0_11 = arith.constant 0 : index
    %c0_12 = arith.constant 0 : index
    %21 = vector.load %arg5[%c0_11, %c0_12] : memref<8x1xf32, #tpu.memory_space<vmem>>, vector<8x1xf32>
    tpu.vector_store %arg5[%c0_11, %c0_12], %9 {strides = array<i32>} : memref<8x1xf32, #tpu.memory_space<vmem>>, vector<8x1xf32>,
    %c0_13 = arith.constant 0 : index
    %c0_14 = arith.constant 0 : index
    %22 = vector.load %arg7[%c0_13, %c0_14] : memref<8x1xf32, #tpu.memory_space<vmem>>, vector<8x1xf32>
    %cst_15 = arith.constant dense<0.000000e+00> : vector<8xf32>
    %23 = vector.multi_reduction <add>, %5, %cst_15 [1] : vector<8x32xf32> to vector<8xf32>
    %24 = vector.shape_cast %23 : vector<8xf32> to vector<8x1xf32>
    %25 = arith.addf %22, %24 : vector<8x1xf32>
    %c0_16 = arith.constant 0 : index
    %c0_17 = arith.constant 0 : index
    %26 = vector.load %arg7[%c0_16, %c0_17] : memref<8x1xf32, #tpu.memory_space<vmem>>, vector<8x1xf32>
    tpu.vector_store %arg7[%c0_16, %c0_17], %25 {strides = array<i32>} : memref<8x1xf32, #tpu.memory_space<vmem>>, vector<8x1xf32>,
    %c0_18 = arith.constant 0 : index
    %c0_19 = arith.constant 0 : index
    %27 = vector.load %arg8[%c0_18, %c0_19] : memref<8x1xf32, #tpu.memory_space<vmem>>, vector<8x1xf32>
    %cst_20 = arith.constant dense<0.000000e+00> : vector<8xf32>
    %28 = vector.multi_reduction <add>, %4, %cst_20 [1] : vector<8x32xf32> to vector<8xf32>
    %29 = vector.shape_cast %28 : vector<8xf32> to vector<8x1xf32>
    %30 = arith.addf %27, %29 : vector<8x1xf32>
    %c0_21 = arith.constant 0 : index
    %c0_22 = arith.constant 0 : index
    %31 = vector.load %arg8[%c0_21, %c0_22] : memref<8x1xf32, #tpu.memory_space<vmem>>, vector<8x1xf32>
    tpu.vector_store %arg8[%c0_21, %c0_22], %30 {strides = array<i32>} : memref<8x1xf32, #tpu.memory_space<vmem>>, vector<8x1xf32>,
    %c0_i32_23 = arith.constant 0 : i32
    %32 = arith.cmpi eq, %arg1, %c0_i32_23 : i32
    %33 = arith.extui %32 : i1 to i32
    %c0_i32_24 = arith.constant 0 : i32
    %34 = arith.cmpi ne, %33, %c0_i32_24 : i32
    scf.if %34 {
      %c0_25 = arith.constant 0 : index
      %c0_26 = arith.constant 0 : index
      %35 = vector.load %arg5[%c0_25, %c0_26] : memref<8x1xf32, #tpu.memory_space<vmem>>, vector<8x1xf32>
      %c0_27 = arith.constant 0 : index
      %c0_28 = arith.constant 0 : index
      %36 = vector.load %arg6[%c0_27, %c0_28] : memref<8x1xf32, #tpu.memory_space<vmem>>, vector<8x1xf32>
      %37 = math.log %36 : vector<8x1xf32>
      %38 = arith.addf %35, %37 : vector<8x1xf32>
      %c0_29 = arith.constant 0 : index
      %c0_30 = arith.constant 0 : index
      %39 = vector.load %arg8[%c0_29, %c0_30] : memref<8x1xf32, #tpu.memory_space<vmem>>, vector<8x1xf32>
      %40 = arith.mulf %38, %39 : vector<8x1xf32>
      %c0_31 = arith.constant 0 : index
      %c0_32 = arith.constant 0 : index
      %41 = vector.load %arg7[%c0_31, %c0_32] : memref<8x1xf32, #tpu.memory_space<vmem>>, vector<8x1xf32>
      %42 = arith.subf %40, %41 : vector<8x1xf32>
      %cst_33 = arith.constant 0.000000e+00 : f32
      %43 = vector.broadcast %cst_33 : f32 to vector<1x8x128xf32>
      %44 = vector.shape_cast %42 : vector<8x1xf32> to vector<1x8x1xf32>
      %cst_34 = arith.constant dense<0.000000e+00> : vector<1xf32>
      %45 = vector.multi_reduction <add>, %44, %cst_34 [1, 2] : vector<1x8x1xf32> to vector<1xf32>
      %46 = vector.shape_cast %45 : vector<1xf32> to vector<1x1x1xf32>
      %47 = vector.extract %46[0, 0, 0] : f32 from vector<1x1x1xf32>
      %48 = vector.broadcast %47 : f32 to vector<1x8x128xf32>
      %49 = arith.addf %43, %48 : vector<1x8x128xf32>
      %c0_35 = arith.constant 0 : index
      %c0_36 = arith.constant 0 : index
      %c0_37 = arith.constant 0 : index
      %50 = vector.load %arg4[%c0_35, %c0_36, %c0_37] : memref<1x8x128xf32, #tpu.memory_space<vmem>>, vector<1x8x128xf32>
      tpu.vector_store %arg4[%c0_35, %c0_36, %c0_37], %49 {strides = array<i32>} : memref<1x8x128xf32, #tpu.memory_space<vmem>>, vector<1x8x128xf32>,
    } else {
    }
    return
  }
  func.func @transform_0(%arg0: i32, %arg1: i32) -> (i32, i32) {
    %c0_i32 = arith.constant 0 : i32
    return %arg0, %arg1 : i32, i32
  }
  func.func @transform_1(%arg0: i32, %arg1: i32) -> (i32, i32) {
    %c0_i32 = arith.constant 0 : i32
    return %arg0, %arg1 : i32, i32
  }
  func.func @transform_2(%arg0: i32, %arg1: i32) -> (i32, i32, i32) {
    %c0_i32 = arith.constant 0 : i32
    %c0_i32_0 = arith.constant 0 : i32
    %c0_i32_1 = arith.constant 0 : i32
    return %arg0, %c0_i32, %c0_i32_0 : i32, i32, i32
  }
}

</mosaic_0001>

<bundles_post_ra>
// kernel: tpu_custom_call.1
= control target key start
LH: loop header
LB: loop body
LE: loop exit
PB: predicated region body
PF: predicated region fallthrough
CT: control target
= control target key end

     0   :  { %7 = vsyncpa [#allocation7], 0  ;;  %s908_s0 = inlined_call_operand.hbm [shape: f32[16,32], index: 0, kind: input, shape index: {}]   ;;  %s909_s1 = inlined_call_operand.hbm [shape: f32[16,32], index: 1, kind: input, shape index: {}]   ;;  %s910_s2 = inlined_call_operand.hbm [shape: f32[2,8,128], index: 2, kind: output, shape index: {}]  }
   0x1   :  { %9 = vsyncpa [#allocation7 + $0x1], 0 }
   0x2   :  { %10 = vsyncpa [#allocation10], 0 }
   0x3   :  { %12 = vsyncpa [#allocation10 + $0x1], 0 }
   0x4   :  { %13 = vsyncpa [#allocation8], 0 }
   0x5   :  { %15 = vsyncpa [#allocation8 + $0x1], 0  ;;  %s670_s9 = smov 0   ;;  %s672_s10 = smov 0  }
   0x6   :  { %s674_s11 = smov 0   ;;  %s676_s12 = smov 0  }
   0x7   :  { %s678_s13 = smov 0   ;;  %s680_s14 = smov 0  }
   0x8 LB: > { %s406_s15 = sadd.s32 4294967295, %s647_s14   ;;  %s407_s16 = sadd.s32 4294967294, %s647_s14   ;;  %s647_s14 = sphi %s680_s14, %s21_s14   ;;  %s643_s13 = sphi %s678_s13, %s930_s13   ;;  %s639_s12 = sphi %s676_s12, %s929_s12   ;;  %s635_s11 = sphi %s674_s11, %s928_s11   ;;  %s631_s10 = sphi %s672_s10, %s927_s10   ;;  %s627_s9 = sphi %s670_s9, %s926_s9  }
   0x9   : > { %s33_s17 = sadd.s32 1, %s643_s13  ;;  %s42_s18 = sadd.s32 1, %s635_s11 }
   0xa   : > { %p35_p0 = scmp.ge.s32.totalorder %s33_s17, 2  ;;  %p49_p1 = scmp.ne.s32.totalorder %s635_s11, %s631_s10 }
   0xb   : > { %p50_p2 = scmp.eq.s32.totalorder %s647_s14, 0  ;;  %p55_p3 = scmp.ne.s32.totalorder %s631_s10, %s627_s9 }
   0xc   : > { %s932_s17 = smov (%p35_p0, %s33_s17), 0  ;;  %p56_p5 = scmp.eq.s32.totalorder %s406_s15, 0 }
   0xd   : > { %p711_p4 = por %p50_p2, %p49_p1  ;;  %s37_s20 = ssub.s32 %s643_s13, %s932_s17 }
   0xe   : > { %p107_p6 = scmp.eq.s32.totalorder %s406_s15, 1  ;;  %p40_p7 = scmp.eq.s32.totalorder %s37_s20, 0 }
   0xf   : > { %p717_p8 = por %p56_p5, %p55_p3  ;;  %p113_p10 = scmp.eq.s32.totalorder %s407_s16, 1 }
  0x10   : > { %p721_p9 = por %p107_p6, %p49_p1  ;;  %p441_p13 = scmp.lt.s32.totalorder %s647_s14, 2 }
  0x11   : > { %s914_s21 = scalar_select %p717_p8, 1, 0 }
  0x12   : > { %s915_s22 = scalar_select %p721_p9, 1, 0 }
  0x13   : > { %s726_s23 = scalar_select %p40_p7, %s635_s11, %s42_s18  }
  0x14   : > { %p728_p11 = por %p113_p10, %p55_p3  ;;  %s735_s25 = sand.u32 1, %s635_s11  }
  0x15   : > { %s410_s26 = sshll.u32 %s735_s25, 3  ;;  %s411_s27 = sshll.u32 %s643_s13, 7 }
  0x16   : > { %s916_s24 = scalar_select %p728_p11, 1, 0 }
  0x17   : > { %s744_s30 = scalar_lea.hbm %s908_s0, %s411_s27  ;;  %s137_s3 = scalar_lea.vmem [#allocation6], %s410_s26 }
  0x18   : > { %s145_s4 = sshll.u32 %s137_s3, 4  ;;  %p752_p0 = pnand %p441_p13, %p711_p4  ;;  %s748_s4 = int_to_ptr.vmem [resolvable:$true] %s145_s4 }
  0x19   : > { %s134_s6 = scalar_lea.sflag [#allocation7], %s735_s25  ;;  %s501_s7 = scalar_lea.hbm %s744_s30, 128 }
  0x1a   : > { %p502_p3 = scmp.ne.s32.totalorder %s744_s30, %s501_s7  ;;  %p503_p5 = pneg %p752_p0 }
  0x1b   : > { %s506_s16 = scalar_lea.hbm %s908_s0, 256  ;;  %p507_p4 = scmp.lt.u32.totalorder %s744_s30, %s908_s0 }
  0x1c   : > { %p504_p6 = pnand %p503_p5, %p502_p3  ;;  %p508_p10 = scmp.lt.u32.totalorder %s506_s16, %s501_s7 }
  0x1d   : > { %p510_p12 = scmp.lt.u32.totalorder %s501_s7, %s744_s30 }
  0x1e   : > { %p505_p7 = pneg %p504_p6  ;;  %p509_p13 = por %p508_p10, %p507_p4 }
  0x20   : > { %p511_p1 = por %p510_p12, %p509_p13 }
  0x22   : > { %p512_p2 = pnand %p511_p1, %p505_p7 }
  0x24   : > { %515 = shalt.err (!%p512_p2)
}
  0x25   : > { %s516_s20 = scalar_lea.vmem %s748_s4, 128  ;;  %s649_s28 = smov [#allocation6]  }
  0x26   : > { %p517_p3 = scmp.ne.s32.totalorder %s748_s4, %s516_s20  ;;  %s521_s29 = sshll.u32 %s649_s28, 4  ;;  %s522_s29 = int_to_ptr.vmem [resolvable:$false] %s521_s29 }
  0x27   : > { %s523_s3 = scalar_lea.vmem %s522_s29, 256  ;;  %p524_p9 = scmp.lt.s32.totalorder %s748_s4, %s522_s29 }
  0x28   : > { %p519_p6 = pnand %p517_p3, %p503_p5  ;;  %p525_p4 = scmp.lt.s32.totalorder %s523_s3, %s516_s20 }
  0x2a   : > { %p520_p11 = pneg %p519_p6  ;;  %p526_p10 = por %p525_p4, %p524_p9 }
  0x2c   : > { %p527_p12 = pnand %p526_p10, %p520_p11 }
  0x2e   : > { %530 = shalt.err (!%p527_p12)
}
  0x2f   : > { %433 = dma.hbm_to_vmem [thread:$0]  (!%p752_p0), %s744_s30, 128, %s748_s4, %s134_s6  }
  0x30   : > { %p918_p1 = scmp.lt.s32.totalorder %s647_s14, 3  ;;  %p919_p2 = scmp.ge.s32.totalorder %s647_s14, 1 }
  0x31   : > { %s797_s16 = scalar_lea.hbm %s909_s1, %s411_s27  ;;  %s156_s18 = scalar_lea.vmem [#allocation9], %s410_s26 }
  0x32   : > { %p788_p7 = pnand %p919_p2, %p918_p1  ;;  %s164_s19 = sshll.u32 %s156_s18, 4  ;;  %s165_s19 = int_to_ptr.vmem [resolvable:$true] %s164_s19 }
  0x33   : > { %s153_s30 = scalar_lea.sflag [#allocation10], %s735_s25  ;;  %s531_s4 = scalar_lea.hbm %s797_s16, 128 }
  0x34   : > { %s920_s7 = scalar_select %p788_p7, 1, 0 }
  0x35   : > { %p532_p9 = scmp.ne.s32.totalorder %s797_s16, %s531_s4  ;;  %s536_s27 = scalar_lea.hbm %s909_s1, 256 }
  0x36   : > { %p537_p3 = scmp.lt.u32.totalorder %s797_s16, %s909_s1  ;;  %p538_p6 = scmp.lt.u32.totalorder %s536_s27, %s531_s4 }
  0x37   : > { %p534_p11 = pnand %p532_p9, %p503_p5  ;;  %p540_p10 = scmp.lt.u32.totalorder %s531_s4, %s797_s16 }
  0x38   : > { %p539_p4 = por %p538_p6, %p537_p3 }
  0x39   : > { %p535_p13 = pneg %p534_p11 }
  0x3a   : > { %p541_p12 = por %p540_p10, %p539_p4 }
  0x3c   : > { %p542_p1 = pnand %p541_p12, %p535_p13 }
  0x3e   : > { %545 = shalt.err (!%p542_p1)
}
  0x3f   : > { %s546_s25 = scalar_lea.vmem %s165_s19, 128  ;;  %s650_s26 = smov [#allocation9]  }
  0x40   : > { %p547_p2 = scmp.ne.s32.totalorder %s165_s19, %s546_s25  ;;  %s551_s3 = sshll.u32 %s650_s26, 4  ;;  %s552_s3 = int_to_ptr.vmem [resolvable:$false] %s551_s3 }
  0x41   : > { %s553_s8 = scalar_lea.vmem %s552_s3, 256  ;;  %p554_p8 = scmp.lt.s32.totalorder %s165_s19, %s552_s3 }
  0x42   : > { %p549_p9 = pnand %p547_p2, %p503_p5  ;;  %p555_p7 = scmp.lt.s32.totalorder %s553_s8, %s546_s25 }
  0x44   : > { %p550_p11 = pneg %p549_p9  ;;  %p556_p3 = por %p555_p7, %p554_p8 }
  0x46   : > { %p557_p6 = pnand %p556_p3, %p550_p11 }
  0x48   : > { %560 = shalt.err (!%p557_p6)
}
  0x49   : > { %436 = dma.hbm_to_vmem [thread:$0]  (!%p752_p0), %s797_s16, 128, %s165_s19, %s153_s30  }
  0x4a   : > { %p921_p13 = scmp.ne.s32.totalorder %s920_s7, 0 }
  0x4b   : > { %s824_s15 = sand.u32 (!%p921_p13), 1, %s631_s10   ;;  %p922_p8 = scmp.ne.s32.totalorder (!%p921_p13), %s914_s21, 0 }
  0x4c   : > { %173 = sbr.rel (%p921_p13) target bundleno = 767 (0x2ff), region = 28  ;;  %s827_s18 = sshll.u32 (!%p921_p13), %s824_s15, 3 }
  0x4d   : > { %s176_s4 = scalar_lea.sflag (!%p921_p13), [#allocation7], %s824_s15  ;;  %s179_s6 = scalar_lea.vmem (!%p921_p13), [#allocation6], %s827_s18 }
  0x53   : > { %614 = dma.done.wait (%p922_p8), %s176_s4, 128  }
  0x54   : > { %616 = vsyncadd (%p922_p8), %s176_s4, 4294967168  ;;  %s185_s5 = scalar_lea.sflag [#allocation10], %s824_s15  ;;  %s188_s7 = scalar_lea.vmem [#allocation9], %s827_s18 }
  0x55   : > { %618 = dma.done.wait (%p922_p8), %s185_s5, 128  }
  0x56   : > { %620 = vsyncadd (%p922_p8), %s185_s5, 4294967168  ;;  %vm218_vm0 = vcmask 7168   ;;  %v651_v0 = vmov -inf   ;;  %vm227_vm1 = vcmask 261120   ;;  %v223_v1 = vld [vmem:[%s179_s6] sm:$0xff]  ;;  %v652_v3 = vmov 0  }
  0x57   : > { %219 = vst.msk [vmem:[#allocation2] sm:$0xff] %vm218_vm0, %v651_v0  ;;  %v228_v2 = vsel %vm227_vm1, %v223_v1, -inf  ;;  %494 = vset.pattern.permute.xlu0 %v652_v3  ;;  %v653_v4 = vmov 0.0   ;;  %v224_v13 = vld [vmem:[%s188_s7] sm:$0xff]  ;;  %s213_s21 = scalar_lea.vmem [#allocation11], %s827_s18  ;;  %s419_s19 = sshll.u32 %s639_s12, 7 }
  0x58   : > { %229 = vmax.xlane.f32.xlu0 %v228_v2  ;;  %220 = vst.msk [vmem:[#allocation3] sm:$0xff] %vm218_vm0, %v653_v4  ;;  %221 = vst.msk [vmem:[#allocation4] sm:$0xff] %vm218_vm0, %v653_v4  ;;  %v259_v15 = vsel %vm227_vm1, %v224_v13, 0.0  ;;  %v225_v16 = vmul.f32 %v224_v13, %v223_v1  ;;  %s303_s16 = sshll.u32 %s213_s21, 4  ;;  %s861_s28 = scalar_lea.hbm %s910_s2, %s419_s19  ;;  %s856_s16 = int_to_ptr.vmem [resolvable:$true] %s303_s16 }
  0x59   : > { %222 = vst.msk [vmem:[#allocation5] sm:$0xff] %vm218_vm0, %v653_v4  ;;  %s290_s29 = scalar_lea.sflag [#allocation8], %s824_s15  ;;  %s561_s25 = scalar_lea.vmem %s856_s16, 128 }
  0x5a   : > { %v253_v17 = vsel %vm227_vm1, %v225_v16, 0.0  ;;  %p562_p0 = scmp.ne.s32.totalorder %s856_s16, %s561_s25  ;;  %p923_p5 = scmp.ne.s32.totalorder %s915_s22, 0 }
  0x5b   : > { %s654_s12 = smov [#allocation11]  }
  0x5c   : > { %p563_p7 = pnand %p562_p0, %p923_p5  ;;  %s565_s26 = sshll.u32 %s654_s12, 4  ;;  %s566_s26 = int_to_ptr.vmem [resolvable:$false] %s565_s26 }
  0x5d   : > { %s567_s3 = scalar_lea.vmem %s566_s26, 256  ;;  %p568_p10 = scmp.lt.s32.totalorder %s856_s16, %s566_s26 }
  0x5e   : > { %v226_v5 = vld [vmem:[#allocation2] sm:$0xff]  ;;  %p564_p4 = pneg %p563_p7  ;;  %p569_p12 = scmp.lt.s32.totalorder %s567_s3, %s561_s25 }
  0x5f   : > { %v235_v20 = vld [vmem:[#allocation3] sm:$0xff]  ;;  %v252_v27 = vld [vmem:[#allocation4] sm:$0xff] }
  0x60   : > { %v258_v24 = vld [vmem:[#allocation5] sm:$0xff]  ;;  %p570_p1 = por %p569_p12, %p568_p10 }
  0x62   : > { %p571_p2 = pnand %p570_p1, %p564_p4 }
  0xe5   : > { %v230_v6 = vpop.xlane.xlu0 %229 }
  0xe6   : > { %v231_v7 = vmax.f32 %v226_v5, %v230_v6 }
  0xe8   : > { %v232_v8 = vsub.f32 %v226_v5, %v231_v7  ;;  %251 = vst.msk [vmem:[#allocation2] sm:$0xff] %vm218_vm0, %v231_v7  ;;  %239 = vperm.xlu0 %494, %v231_v7  }
  0xea   : > { %v233_v18 = vmul.f32 1.442695, %v232_v8 }
  0xef   : > { %v267_v33 = vld [vmem:[#allocation2] sm:$0xff] }
 0x167   : > { %v240_v9 = vpop.permute.xlu0 %239 }
 0x168   : > { %v242_v10 = vsub.f32 %v223_v1, %v240_v9 }
 0x16a   : > { %v243_v11 = vmul.f32 1.442695, %v242_v10 }
 0x16c   : > { %495 = vpow2.f32 %v243_v11 }
 0x16d   : > { %497 = vpow2.f32 %v233_v18 }
 0x176   : > { %v496_v12 = vpop.eup %495 }
 0x177   : > { %v245_v14 = vsel %vm227_vm1, %v496_v12, 0.0  ;;  %v498_v19 = vpop.eup %497 }
 0x178   : > { %246 = vadd.xlane.f32.xlu1 %v245_v14  ;;  %v236_v21 = vmul.f32 %v498_v19, %v235_v20 }
 0x17c   : > { %260 = vadd.xlane.f32.xlu1 %v259_v15 }
 0x180   : > { %254 = vadd.xlane.f32.xlu1 %v253_v17 }
 0x205   : > { %v247_v22 = vpop.xlane.xlu1 %246 }
 0x206   : > { %v248_v23 = vadd.f32 %v247_v22, %v236_v21 }
 0x208   : > { %250 = vst.msk [vmem:[#allocation3] sm:$0xff] %vm218_vm0, %v248_v23 }
 0x209   : > { %v261_v25 = vpop.xlane.xlu1 %260 }
 0x20a   : > { %v262_v26 = vadd.f32 %v261_v25, %v258_v24 }
 0x20c   : > { %263 = vst.msk [vmem:[#allocation5] sm:$0xff] %vm218_vm0, %v262_v26 }
 0x20d   : > { %v255_v28 = vpop.xlane.xlu1 %254 }
 0x20e   : > { %v256_v29 = vadd.f32 %v255_v28, %v252_v27 }
 0x20f   : > { %v268_v30 = vld [vmem:[#allocation3] sm:$0xff] }
 0x210   : > { %257 = vst.msk [vmem:[#allocation4] sm:$0xff] %vm218_vm0, %v256_v29  ;;  %499 = vlog2.f32 %v268_v30 }
 0x213   : > { %v272_v35 = vld [vmem:[#allocation5] sm:$0xff] }
 0x217   : > { %v274_v36 = vld [vmem:[#allocation4] sm:$0xff] }
 0x21a   : > { %v500_v31 = vpop.eup %499 }
 0x21b   : > { %v270_v32 = vmul.f32 0.6931472, %v500_v31 }
 0x21d   : > { %v271_v34 = vadd.f32 %v270_v32, %v267_v33 }
 0x21f   : > { %v273_v37 = vmul.f32 %v272_v35, %v271_v34 }
 0x221   : > { %v275_v38 = vsub.f32 %v273_v37, %v274_v36 }
 0x223   : > { %v276_v39 = vsel %vm218_vm0, %v275_v38, 0.0 }
 0x224   : > { %277 = vadd.xlane.f32.xlu1 %v276_v39 }
 0x2b1   : > { %v278_v40 = vpop.xlane.xlu1 %277 }
 0x2b2   : > { %v279_v41 = vrot.slane %v278_v40, 4 }
 0x2b4   : > { %v280_v42 = vadd.f32 %v279_v41, %v278_v40 }
 0x2b6   : > { %v281_v43 = vrot.slane %v280_v42, 2 }
 0x2b8   : > { %v282_v44 = vadd.f32 %v281_v43, %v280_v42 }
 0x2ba   : > { %v283_v45 = vrot.slane %v282_v44, 1 }
 0x2bc   : > { %v284_v46 = vadd.f32 %v283_v45, %v282_v44 }
 0x2be   : > { %422 = vpush %v284_v46 }
 0x2ef   : > { %s423_s30 = spop %422 }
 0x2f0   : > { %v286_v47 = vstv %s423_s30 }
 0x2f1   : > { %288 = vst [vmem:[%s213_s21] sm:$0xff] %v286_v47 }
 0x2f2   : > { %574 = shalt.err (!%p571_p2)
}
 0x2f3   : > { %s575_s8 = scalar_lea.hbm %s861_s28, 128  ;;  %s579_s4 = scalar_lea.hbm %s910_s2, 256 }
 0x2f4   : > { %p576_p9 = scmp.ne.s32.totalorder %s861_s28, %s575_s8  ;;  %p580_p6 = scmp.lt.u32.totalorder %s861_s28, %s910_s2 }
 0x2f5   : > { %p581_p13 = scmp.lt.u32.totalorder %s579_s4, %s575_s8  ;;  %p583_p0 = scmp.lt.u32.totalorder %s575_s8, %s861_s28 }
 0x2f6   : > { %p577_p11 = pnand %p576_p9, %p923_p5 }
 0x2f7   : > { %p582_p8 = por %p581_p13, %p580_p6 }
 0x2f8   : > { %p578_p3 = pneg %p577_p11 }
 0x2f9   : > { %p584_p7 = por %p583_p0, %p582_p8 }
 0x2fb   : > { %p585_p4 = pnand %p584_p7, %p578_p3 }
 0x2fd   : > { %588 = shalt.err (!%p585_p4)
}
 0x2fe   : > { %428 = dma.vmem_to_hbm [thread:$0]  (%p923_p5), %s856_s16, 128, %s861_s28, %s290_s29  }
 0x2ff PF: > { %s315_s7 = sand.u32 1, %s627_s9   ;;  %p924_p10 = scmp.ne.s32.totalorder %s916_s24, 0 }
 0x300   : > { %p925_p12 = scmp.ge.s32.totalorder %s647_s14, 2  ;;  %s316_s21 = scalar_lea.sflag [#allocation8], %s315_s7 }
 0x302   : > { %p438_p1 = pnand %p925_p12, %p924_p10 }
 0x304   : > { %622 = dma.done.wait (!%p438_p1), %s316_s21, 128  }
 0x305   : > { %624 = vsyncadd (!%p438_p1), %s316_s21, 4294967168  ;;  %s21_s14 = sadd.s32 1, %s647_s14   ;;  %s926_s9 = smov %s631_s10 }
 0x306   : > { %p18_p2 = scmp.ge.s32.totalorder %s21_s14, 4   ;;  %s927_s10 = smov %s635_s11 }
 0x307   : > { %s928_s11 = smov %s726_s23  ;;  %s929_s12 = smov %s643_s13 }
 0x308   : > { %s930_s13 = smov %s932_s17  ;;  %20 = sbr.rel (!%p18_p2) target bundleno = 8 (0x8), region = 94 }
 0x30f   :  { %321 = vsyncpa [#allocation7], 1 }
 0x310   :  { %323 = vsyncpa [#allocation7 + $0x1], 1 }
 0x311   :  { %324 = vsyncpa [#allocation10], 1 }
 0x312   :  { %326 = vsyncpa [#allocation10 + $0x1], 1 }
 0x313   :  { %327 = vsyncpa [#allocation8], 1 }
 0x314   :  { %329 = vsyncpa [#allocation8 + $0x1], 1 }

</bundles_post_ra>
